<compile_context>
chip_gen: v7x
topology: tpu7x:2x2x1
jax: 0.10.0
libtpu: 0.0.40
codegen_flags: <defaults>
</compile_context>

<pallas_src>
import jax
import jax.numpy as jnp
from jax.experimental import pallas as pl
from jax.experimental.pallas import tpu as pltpu

IN_FEATURES = 485                 # 1 (food) + 4*11*11 (vision)
OUT_FEATURES = 5
VISION_SHAPE = (4, 11, 11)
VISION_FEATURES = 4 * 11 * 11     # 484
SUBLANES = 8                      # out-features padded 5 -> 8 (one sublane group)
W_PACK_LANES = 512                # packed single-state weight width (4 clean vregs/row)
N_PAD = 128                       # lane-dense output width for the batched MXU path


def _round_up(x, m):
    return ((x + m - 1) // m) * m


# ----------------------------------------------------------------------------
# Single-state kernel: VPU multiply + lane reduce, one packed weight operand.
# ----------------------------------------------------------------------------
def _single_linear_kernel(food_ref, vision_ref, w_ref, out_ref):
    # food_ref:   (1, 1)   f32 SMEM   scalar food value
    # vision_ref: (1, 484) int32 VMEM flattened vision (cast in-kernel)
    # w_ref:      (8, 512) f32 VMEM   packed: lanes [0,484)=vision W,
    #                                  lane 484=food W, lane 485=bias, rest 0
    # out_ref:    (8, 1)   f32 VMEM   Qs (rows 0..4 valid)
    food = food_ref[0, 0]
    vis = vision_ref[...].astype(jnp.float32)
    w_vis = w_ref[:, :VISION_FEATURES]                              # (8, 484)
    w_food = w_ref[:, VISION_FEATURES:VISION_FEATURES + 1]          # (8, 1)
    bias = w_ref[:, VISION_FEATURES + 1:VISION_FEATURES + 2]        # (8, 1)
    vis_term = jnp.sum(w_vis * vis, axis=-1, keepdims=True)         # (8, 1)
    out_ref[...] = vis_term + food * w_food + bias


@jax.jit
def _brain_forward_single(w_packed, food, vision):
    vision_row = vision.reshape(1, VISION_FEATURES)          # keep int dtype
    food_arr = jnp.asarray(food, jnp.float32).reshape(1, 1)
    out = pl.pallas_call(
        _single_linear_kernel,
        out_shape=jax.ShapeDtypeStruct((SUBLANES, 1), jnp.float32),
        in_specs=[
            pl.BlockSpec(memory_space=pltpu.MemorySpace.SMEM),   # food scalar
            pl.BlockSpec(memory_space=pltpu.MemorySpace.VMEM),   # vision row
            pl.BlockSpec(memory_space=pltpu.MemorySpace.VMEM),   # packed weights
        ],
        out_specs=pl.BlockSpec(memory_space=pltpu.MemorySpace.VMEM),
    )(food_arr, vision_row, w_packed)
    return out[:OUT_FEATURES, 0]


# ----------------------------------------------------------------------------
# Batched kernel: fused state assembly + bf16 MXU matmul, weight resident.
# ----------------------------------------------------------------------------
def _batched_linear_kernel(food_ref, vis_ref, w_ref, wf_ref, b_ref, out_ref):
    # food_ref: (bt, 1)   int32   wf_ref: (1, 128) f32 (food weight row)
    # vis_ref:  (bt, 484) int32   w_ref:  (484, 128) bf16 (vision weight)
    # b_ref:    (1, 128)  f32     out_ref: (bt, 128) bf16
    vis = vis_ref[...].astype(jnp.float32).astype(jnp.bfloat16)
    acc = jnp.dot(vis, w_ref[...], preferred_element_type=jnp.float32)
    food = food_ref[...].astype(jnp.float32)                 # exact food term
    out_ref[...] = (acc + food * wf_ref[...] + b_ref[...]).astype(out_ref.dtype)


def _select_batch_tiling(B):
    """Returns (b_tile, b_pad).  Step-overhead dominates, so tiles are large;
    for mid-size batches force >= 2 grid steps so v7x megacore can split."""
    if B <= 32:
        b_tile = _round_up(B, 16)               # one full-array block
        return b_tile, b_tile
    if B <= 2048:
        b_tile = _round_up(-(-B // 2), 16)      # exactly two grid steps
        return b_tile, 2 * b_tile
    b_tile = 1024                               # never drop back to 128
    return b_tile, _round_up(B, b_tile)


@jax.jit
def _brain_forward_batch(w_vis_mxu, w_food_row, b_row, food_batch, vision_batch):
    B = food_batch.shape[0]
    vis = vision_batch.reshape(B, VISION_FEATURES)            # keep int dtype
    food_col = food_batch.reshape(B, 1)

    b_tile, b_pad = _select_batch_tiling(B)
    if b_pad != B:
        # Only fires for batch sizes not already a multiple of 16 / tile.
        vis = jnp.pad(vis, ((0, b_pad - B), (0, 0)))
        food_col = jnp.pad(food_col, ((0, b_pad - B), (0, 0)))

    out = pl.pallas_call(
        _batched_linear_kernel,
        out_shape=jax.ShapeDtypeStruct((b_pad, N_PAD), jnp.bfloat16),
        grid=(b_pad // b_tile,),
        in_specs=[
            pl.BlockSpec((b_tile, 1), lambda i: (i, 0)),                  # food
            pl.BlockSpec((b_tile, VISION_FEATURES), lambda i: (i, 0)),    # vision
            pl.BlockSpec((VISION_FEATURES, N_PAD), lambda i: (0, 0)),     # Wvis (resident)
            pl.BlockSpec((1, N_PAD), lambda i: (0, 0)),                   # Wfood row
            pl.BlockSpec((1, N_PAD), lambda i: (0, 0)),                   # bias row
        ],
        out_specs=pl.BlockSpec((b_tile, N_PAD), lambda i: (i, 0)),
        compiler_params=pltpu.CompilerParams(
            dimension_semantics=("parallel",)),   # both TensorCores on v7x
    )(food_col, vis, w_vis_mxu, w_food_row, b_row)
    return out[:B, :OUT_FEATURES]


# ----------------------------------------------------------------------------
# Module wrapper
# ----------------------------------------------------------------------------
class BrainLinearPallas:
    """JAX/Pallas port of BrainLinear: a single Linear(485, 5)."""

    def __init__(self, key):
        # Match torch.nn.Linear default init: U(-1/sqrt(in), 1/sqrt(in)).
        k_w, k_b = jax.random.split(key)
        bound = 1.0 / jnp.sqrt(jnp.float32(IN_FEATURES))
        # PyTorch weight layout: (out_features, in_features)
        self.weight = jax.random.uniform(
            k_w, (OUT_FEATURES, IN_FEATURES), jnp.float32, -bound, bound)
        self.bias = jax.random.uniform(
            k_b, (OUT_FEATURES,), jnp.float32, -bound, bound)

        # Single-state (VPU) layout: one packed (8, 512) f32 block.
        #   lanes [0, 484) = vision weights, 484 = food weight, 485 = bias.
        w_packed = jnp.zeros((SUBLANES, W_PACK_LANES), jnp.float32)
        w_packed = w_packed.at[:OUT_FEATURES, :VISION_FEATURES].set(
            self.weight[:, 1:])
        w_packed = w_packed.at[:OUT_FEATURES, VISION_FEATURES].set(
            self.weight[:, 0])
        w_packed = w_packed.at[:OUT_FEATURES, VISION_FEATURES + 1].set(self.bias)
        self.w_packed = w_packed

        # Batched (MXU) layout: vision-part of W.T padded to (484, 128) bf16;
        # food weight and bias as lane-dense f32 rows.
        self.w_vis_mxu = jnp.zeros((VISION_FEATURES, N_PAD), jnp.bfloat16)
        self.w_vis_mxu = self.w_vis_mxu.at[:, :OUT_FEATURES].set(
            self.weight[:, 1:].T.astype(jnp.bfloat16))
        self.w_food_row = jnp.zeros((1, N_PAD), jnp.float32)
        self.w_food_row = self.w_food_row.at[0, :OUT_FEATURES].set(
            self.weight[:, 0])
        self.b_row = jnp.zeros((1, N_PAD), jnp.float32)
        self.b_row = self.b_row.at[0, :OUT_FEATURES].set(self.bias)

    def forward(self, s):
        """s = (food, vision); vision is a (4, 11, 11) int array. Returns (5,) Qs."""
        food, vision = s
        return _brain_forward_single(self.w_packed, food, vision)

    def forward_batch(self, food_batch, vision_batch):
        """Batched variant: food (B,), vision (B, 4, 11, 11) -> Qs (B, 5) bf16."""
        return _brain_forward_batch(self.w_vis_mxu, self.w_food_row, self.b_row,
                                    food_batch, vision_batch)

    def __call__(self, s):
        return self.forward(s)

    # TODO(synk): policy methods (pi_epsilon_greedy / pi_probabilistic / pi_random)
    # use host-side Python RNG and control flow; they are not kernel work.


if __name__ == "__main__":
    key = jax.random.PRNGKey(0)
    k_params, k_vision, k_batch = jax.random.split(key, 3)

    brain = BrainLinearPallas(k_params)

    # --- single-state path (matches the torch module's forward(s)) ---
    vision = jax.random.randint(k_vision, VISION_SHAPE, 0, 4, dtype=jnp.int32)
    food = 7
    qs = brain.forward((food, vision))
    qs = jax.block_until_ready(qs)

    vision_flat = vision.astype(jnp.float32).reshape(-1)
    state = jnp.concatenate([jnp.array([float(food)], jnp.float32), vision_flat])
    qs_ref = state @ brain.weight.T + brain.bias
    assert qs.shape == (OUT_FEATURES,)
    assert jnp.allclose(qs, qs_ref, atol=1e-4, rtol=1e-4)

    # --- batched path, small batch (single grid step) ---
    B = 8
    kb_v, kb_f = jax.random.split(k_batch)
    vision_b = jax.random.randint(kb_v, (B,) + VISION_SHAPE, 0, 4, dtype=jnp.int32)
    food_b = jax.random.randint(kb_f, (B,), 0, 10, dtype=jnp.int32)
    qs_b = brain.forward_batch(food_b, vision_b)
    qs_b = jax.block_until_ready(qs_b)

    states_b = jnp.concatenate(
        [food_b[:, None].astype(jnp.float32),
         vision_b.astype(jnp.float32).reshape(B, -1)], axis=1)
    qs_b_ref = states_b @ brain.weight.T + brain.bias
    assert qs_b.shape == (B, OUT_FEATURES)
    # bf16 weights/activations/output on the MXU path -> looser tolerance.
    assert jnp.allclose(qs_b, qs_b_ref, atol=5e-2, rtol=5e-2)

    # --- batched path, mid batch (two grid steps + ragged-batch padding) ---
    B2 = 48
    kb_v2, kb_f2 = jax.random.split(kb_v)
    vision_b2 = jax.random.randint(kb_v2, (B2,) + VISION_SHAPE, 0, 4, dtype=jnp.int32)
    food_b2 = jax.random.randint(kb_f2, (B2,), 0, 10, dtype=jnp.int32)
    qs_b2 = brain.forward_batch(food_b2, vision_b2)
    qs_b2 = jax.block_until_ready(qs_b2)

    states_b2 = jnp.concatenate(
        [food_b2[:, None].astype(jnp.float32),
         vision_b2.astype(jnp.float32).reshape(B2, -1)], axis=1)
    qs_b2_ref = states_b2 @ brain.weight.T + brain.bias
    assert qs_b2.shape == (B2, OUT_FEATURES)
    assert jnp.allclose(qs_b2, qs_b2_ref, atol=5e-2, rtol=5e-2)

    print("KERNEL_OK")
</pallas_src>

<mosaic_0001>
module attributes {stable_mosaic.version = 11 : i64} {
  func.func @_single_linear_kernel(%arg0: memref<1x1xf32, #tpu.memory_space<smem>>, %arg1: memref<1x484xi32, #tpu.memory_space<vmem>>, %arg2: memref<8x512xf32, #tpu.memory_space<vmem>>, %arg3: memref<8x1xf32, #tpu.memory_space<vmem>>) attributes {dimension_semantics = [], scalar_prefetch = 0 : i64, scratch_operands = 0 : i64, tpu.core_type = #tpu.core_type<tc>} {
    %c0 = arith.constant 0 : index
    %c0_0 = arith.constant 0 : index
    %0 = memref.load %arg0[%c0, %c0_0] : memref<1x1xf32, #tpu.memory_space<smem>>
    %c0_1 = arith.constant 0 : index
    %c0_2 = arith.constant 0 : index
    %1 = vector.load %arg1[%c0_1, %c0_2] : memref<1x484xi32, #tpu.memory_space<vmem>>, vector<1x484xi32>
    %2 = arith.sitofp %1 : vector<1x484xi32> to vector<1x484xf32>
    %c0_3 = arith.constant 0 : index
    %c0_4 = arith.constant 0 : index
    %3 = vector.load %arg2[%c0_3, %c0_4] : memref<8x512xf32, #tpu.memory_space<vmem>>, vector<8x484xf32>
    %c0_5 = arith.constant 0 : index
    %c484 = arith.constant 484 : index
    %4 = vector.load %arg2[%c0_5, %c484] : memref<8x512xf32, #tpu.memory_space<vmem>>, vector<8x1xf32>
    %c0_6 = arith.constant 0 : index
    %c485 = arith.constant 485 : index
    %5 = vector.load %arg2[%c0_6, %c485] : memref<8x512xf32, #tpu.memory_space<vmem>>, vector<8x1xf32>
    %6 = vector.broadcast %2 : vector<1x484xf32> to vector<8x484xf32>
    %7 = arith.mulf %3, %6 : vector<8x484xf32>
    %cst = arith.constant dense<0.000000e+00> : vector<8xf32>
    %8 = vector.multi_reduction <add>, %7, %cst [1] : vector<8x484xf32> to vector<8xf32>
    %9 = vector.shape_cast %8 : vector<8xf32> to vector<8x1xf32>
    %10 = vector.broadcast %0 : f32 to vector<8x1xf32>
    %11 = arith.mulf %10, %4 : vector<8x1xf32>
    %12 = arith.addf %9, %11 : vector<8x1xf32>
    %13 = arith.addf %12, %5 : vector<8x1xf32>
    %c0_7 = arith.constant 0 : index
    %c0_8 = arith.constant 0 : index
    %14 = vector.load %arg3[%c0_7, %c0_8] : memref<8x1xf32, #tpu.memory_space<vmem>>, vector<8x1xf32>
    tpu.vector_store %arg3[%c0_7, %c0_8], %13 {strides = array<i32>} : memref<8x1xf32, #tpu.memory_space<vmem>>, vector<8x1xf32>,
    return
  }
}

</mosaic_0001>

<bundles_post_ra>
// kernel: _brain_forward_single.1
= control target key start
LH: loop header
LB: loop body
LE: loop exit
PB: predicated region body
PF: predicated region fallthrough
CT: control target
= control target key end

     0   :  { %v23_v0 = vlaneseq  ;;  %vm49_vm0 = vcmask 818176   ;;  %s74_s21 = smov 127   ;;  %vm66_vm1 = vcmask 7168   ;;  %s117_s1 = inlined_call_operand.vmem [shape: s32[1,484], index: 1, kind: input, shape index: {}]   ;;  %s118_s2 = inlined_call_operand.vmem [shape: f32[8,512], index: 2, kind: input, shape index: {}]   ;;  %s119_s0 = inlined_call_operand.<no memory space> [shape: f32[1,1], index: 0, kind: input, shape index: {}]   ;;  %s120_s3 = inlined_call_operand.vmem [shape: f32[8,1], index: 3, kind: output, shape index: {}]  }
   0x1   :  { %v16_v1 = vld [vmem:[%s117_s1] sm:$0xf]  ;;  %v19_v9 = vld [vmem:[%s118_s2 + $0x8] sm:$0xff]  ;;  %v20_v10 = vld [vmem:[%s118_s2 + $0x10] sm:$0xff]  ;;  %v54_v24 = vstv %s119_s0 }
   0x2   :  { %v17_v2 = vcvt.s32.f32 %v16_v1  ;;  %v24_v3 = vshrl.u32 %v23_v0, 7  ;;  %v18_v4 = vld [vmem:[%s118_s2] sm:$0xff]  ;;  %v21_v11 = vld [vmem:[%s118_s2 + $0x18] sm:$0xff]  ;;  %s75_s2 = smov 28  }
   0x3   :  { %v55_v25 = vmul.f32 %v54_v24, %v21_v11 }
   0x4   :  { %v25_v5 = vsub.s32 0, %v24_v3  ;;  %v29_v6 = vsub.s32 1, %v24_v3  ;;  %v33_v7 = vsub.s32 2, %v24_v3  ;;  %v37_v8 = vsub.s32 3, %v24_v3 }
   0x6   :  { %v26_v12 = vrot.slane %v17_v2, %v25_v5  ;;  %v30_v13 = vrot.slane %v17_v2, %v29_v6  ;;  %v34_v14 = vrot.slane %v17_v2, %v33_v7  ;;  %v38_v15 = vrot.slane %v17_v2, %v37_v8 }
   0x8   :  { %v43_v16 = vmul.f32 %v26_v12, %v18_v4  ;;  %v44_v17 = vmul.f32 %v30_v13, %v19_v9  ;;  %v45_v18 = vmul.f32 %v34_v14, %v20_v10  ;;  %v46_v19 = vmul.f32 %v38_v15, %v21_v11 }
   0xa   :  { %v47_v20 = vadd.f32 %v44_v17, %v43_v16  ;;  %v50_v21 = vsel %vm49_vm0, %v46_v19, 0.0 }
   0xc   :  { %v48_v22 = vadd.f32 %v47_v20, %v45_v18 }
   0xe   :  { %v51_v23 = vadd.f32 %v50_v21, %v48_v22 }
  0x10   :  { %52 = vadd.xlane.f32.xlu0 %v51_v23 }
  0x26   :  { %58 = vrot.lane.b32.xlu0 %v21_v11, %s74_s21 }
  0x9d   :  { %v53_v26 = vpop.xlane.xlu0 %52 }
  0x9e   :  { %v56_v27 = vadd.f32 %v55_v25, %v53_v26 }
  0xa1   :  { %v59_v28 = vpop.permute.xlu0 %58 }
  0xa2   :  { %v61_v29 = vadd.f32 %v59_v28, %v56_v27 }
  0xa4   :  { %63 = vrot.lane.b32.xlu1 %v61_v29, %s75_s2 }
 0x116   :  { %v64_v30 = vpop.permute.xlu1 %63 }
 0x117   :  { %67 = vst.msk [vmem:[%s120_s3] sm:$0xff] %vm66_vm1, %v64_v30 }

</bundles_post_ra>
